<compile_context>
chip_gen: v5e
topology: v5e:2x2
jax: 0.10.0
libtpu: 0.0.40
codegen_flags: <defaults>
</compile_context>

<pallas_src>
import jax
import jax.numpy as jnp
from jax.experimental import pallas as pl
from jax.experimental.pallas import tpu as pltpu


def _ncrelu_kernel(x_ref, o_ref):
    # x_ref: (TR, L)     input row-tile
    # o_ref: (2, TR, L)  o[0] = positive part, o[1] = negative part
    x = x_ref[...]
    o_ref[0] = jnp.maximum(x, 0).astype(o_ref.dtype)
    o_ref[1] = jnp.minimum(x, 0).astype(o_ref.dtype)


def _sublane_quantum(dtype):
    """Native sublane tile height: 8 for 32-bit, 16 for 16-bit, 32 for 8-bit."""
    itemsize = jnp.dtype(dtype).itemsize
    return max(8, 32 // itemsize)


def _chip_kind():
    try:
        return jax.devices()[0].device_kind.lower()
    except Exception:
        return ""


def _tile_target_bytes(kind):
    """Per-step input-tile byte budget (pipeline footprint ~6x this)."""
    if "v7" in kind or "v6" in kind:
        # 4 MiB tile -> ~24 MiB pipeline, fits the 32 MiB default scoped VMEM.
        return 4 * 1024 * 1024
    # v5e (16 MiB default scoped-VMEM limit) / unknown: stay at 2 MiB (~12 MiB).
    return 2 * 1024 * 1024


def _choose_layout(total, sub_q):
    """Pick (rows, lanes, padded_total) with lanes a multiple of 128.

    Prefers layouts whose row count is a multiple of the dtype's sublane
    quantum. If C*H*W is not divisible by 128, the slab is padded so the
    kernel never emits masked lane-partial stores.
    """
    for need_q_rows in (True, False):
        for lanes in (512, 256, 128):
            if total % lanes:
                continue
            rows = total // lanes
            if rows >= sub_q and (not need_q_rows or rows % sub_q == 0):
                return rows, lanes, total
    for lanes in (512, 256, 128):
        if total % lanes == 0:
            return total // lanes, lanes, total
    # Not divisible by 128: pad to the next multiple of 128 (lane-dense slab).
    lanes = 128
    padded = ((total + lanes - 1) // lanes) * lanes
    return padded // lanes, lanes, padded


def _choose_row_tile(rows, lanes, itemsize, sub_q, target_bytes):
    """Row-tile: ~target_bytes of input per step, multiple of the sublane
    quantum, preferring an exact divisor of rows (no ragged last tile)."""
    if rows <= sub_q:
        return rows  # full-dim block: always legal
    tr = max(1, target_bytes // (lanes * itemsize))
    tr = max(sub_q, (tr // sub_q) * sub_q)
    tr = min(tr, (rows // sub_q) * sub_q)
    if rows % tr:
        for cand in range(tr, sub_q - 1, -sub_q):
            if rows % cand == 0:
                return cand
    return tr


def _balance_two_cores(rows, tr, sub_q, n_batch):
    """v7x shards 'parallel' grid axes over 2 TensorCores: keep the total
    grid (n_batch * row_tiles) even so neither core idles."""
    def n_tiles(t):
        return -(-rows // t)

    if tr <= sub_q or (n_batch * n_tiles(tr)) % 2 == 0:
        return tr
    for cand in range(tr - sub_q, sub_q - 1, -sub_q):
        if (n_batch * n_tiles(cand)) % 2 == 0:
            return cand
    return tr


def ncrelu(x, *, force_pallas=False):
    """x: (N, C, H, W) -> (N, 2C, H, W), matching torch ncrelu."""
    n, c, h, w = x.shape
    total = c * h * w
    itemsize = jnp.dtype(x.dtype).itemsize

    # Small-problem fast path: launch + pipeline prologue dominates tiny
    # inputs; XLA's fused elementwise path is faster there.
    if not force_pallas and total * itemsize < (1 << 20):
        return jnp.concatenate([jnp.maximum(x, 0), jnp.minimum(x, 0)], axis=1)

    sub_q = _sublane_quantum(x.dtype)
    kind = _chip_kind()
    target_bytes = _tile_target_bytes(kind)

    rows, lanes, padded_total = _choose_layout(total, sub_q)
    pad = padded_total - total

    xf = x.reshape(n, total)
    if pad:
        xf = jnp.pad(xf, ((0, 0), (0, pad)))
    x2 = xf.reshape(n, rows, lanes)

    tr = _choose_row_tile(rows, lanes, itemsize, sub_q, target_bytes)
    if "v7" in kind:
        tr = _balance_two_cores(rows, tr, sub_q, n)
    grid_r = pl.cdiv(rows, tr)

    out = pl.pallas_call(
        _ncrelu_kernel,
        out_shape=jax.ShapeDtypeStruct((n, 2, rows, lanes), x.dtype),
        grid_spec=pltpu.PrefetchScalarGridSpec(
            num_scalar_prefetch=0,
            grid=(n, grid_r),
            in_specs=[
                pl.BlockSpec((None, tr, lanes), lambda b, r: (b, r, 0)),
            ],
            out_specs=pl.BlockSpec(
                (None, 2, tr, lanes), lambda b, r: (b, 0, r, 0)
            ),
        ),
        compiler_params=pltpu.CompilerParams(
            dimension_semantics=("parallel", "parallel"),
        ),
        cost_estimate=pl.CostEstimate(
            flops=2 * n * padded_total,
            transcendentals=0,
            bytes_accessed=3 * n * padded_total * itemsize,
        ),
    )(x2)

    # (N, 2, R, L) -> drop pad -> (N, 2C, H, W): contiguous reshape, positive
    # channels first, negative channels last — identical to torch.cat(..., dim=1).
    out = out.reshape(n, 2, rows * lanes)
    if pad:
        out = out[:, :, :total]
    return out.reshape(n, 2 * c, h, w)


if __name__ == "__main__":
    key = jax.random.PRNGKey(0)

    # Shape implied by the module (NCHW conv activations), kept small.
    N, C, H, W = 2, 4, 16, 16
    x = jax.random.normal(key, (N, C, H, W), dtype=jnp.float32)

    # Exercise the Pallas kernel path explicitly (the wrapper would otherwise
    # route this tiny problem through the pure-JAX fast path).
    y = jax.block_until_ready(ncrelu(x, force_pallas=True))
    ref = jnp.concatenate([jnp.maximum(x, 0), jnp.minimum(x, 0)], axis=1)
    assert y.shape == (N, 2 * C, H, W), y.shape
    assert jnp.allclose(y, ref), "mismatch vs reference (f32, lane-dense)"

    # Padded path: C*H*W = 147 is not a multiple of 128.
    xp = jax.random.normal(jax.random.PRNGKey(1), (2, 3, 7, 7), dtype=jnp.float32)
    yp = jax.block_until_ready(ncrelu(xp, force_pallas=True))
    refp = jnp.concatenate([jnp.maximum(xp, 0), jnp.minimum(xp, 0)], axis=1)
    assert yp.shape == (2, 6, 7, 7), yp.shape
    assert jnp.allclose(yp, refp), "mismatch vs reference (padded slab)"

    # bf16 path exercises the dtype-aware (16, 128) sublane quantum.
    xb = jax.random.normal(jax.random.PRNGKey(2), (2, 8, 16, 32), dtype=jnp.bfloat16)
    yb = jax.block_until_ready(ncrelu(xb, force_pallas=True))
    refb = jnp.concatenate([jnp.maximum(xb, 0), jnp.minimum(xb, 0)], axis=1)
    assert jnp.array_equal(yb, refb), "mismatch vs reference (bf16)"

    # Default dispatch (tiny-input fast path) stays correct too.
    y_fast = jax.block_until_ready(ncrelu(x))
    assert jnp.allclose(y_fast, ref), "mismatch vs reference (fast path)"

    print("KERNEL_OK")
</pallas_src>

<mosaic_0001>
module attributes {stable_mosaic.version = 11 : i64} {
  func.func @_ncrelu_kernel(%arg0: i32, %arg1: i32, %arg2: memref<1x8x128xf32, #tpu.memory_space<vmem>>, %arg3: memref<1x2x8x128xf32, #tpu.memory_space<vmem>>) attributes {dimension_semantics = [#tpu.dimension_semantics<parallel>, #tpu.dimension_semantics<parallel>], iteration_bounds = array<i64: 2, 1>, scalar_prefetch = 0 : i64, scratch_operands = 0 : i64, tpu.core_type = #tpu.core_type<tc>, window_params = [{transform_indices = @transform_0, window_bounds = array<i64: 1, 8, 128>}, {transform_indices = @transform_1, window_bounds = array<i64: 1, 2, 8, 128>}]} {
    %c0 = arith.constant 0 : index
    %c0_0 = arith.constant 0 : index
    %c0_1 = arith.constant 0 : index
    %0 = vector.load %arg2[%c0, %c0_0, %c0_1] : memref<1x8x128xf32, #tpu.memory_space<vmem>>, vector<1x8x128xf32>
    %1 = vector.shape_cast %0 : vector<1x8x128xf32> to vector<8x128xf32>
    %cst = arith.constant 0.000000e+00 : f32
    %2 = vector.broadcast %cst : f32 to vector<8x128xf32>
    %3 = arith.maximumf %1, %2 : vector<8x128xf32>
    %c0_2 = arith.constant 0 : index
    %c0_3 = arith.constant 0 : index
    %c0_4 = arith.constant 0 : index
    %c0_5 = arith.constant 0 : index
    %4 = vector.load %arg3[%c0_2, %c0_3, %c0_4, %c0_5] : memref<1x2x8x128xf32, #tpu.memory_space<vmem>>, vector<1x1x8x128xf32>
    %5 = vector.shape_cast %4 : vector<1x1x8x128xf32> to vector<8x128xf32>
    %6 = vector.shape_cast %3 : vector<8x128xf32> to vector<1x1x8x128xf32>
    tpu.vector_store %arg3[%c0_2, %c0_3, %c0_4, %c0_5], %6 {strides = array<i32>} : memref<1x2x8x128xf32, #tpu.memory_space<vmem>>, vector<1x1x8x128xf32>,
    %cst_6 = arith.constant 0.000000e+00 : f32
    %7 = vector.broadcast %cst_6 : f32 to vector<8x128xf32>
    %8 = arith.minimumf %1, %7 : vector<8x128xf32>
    %c0_7 = arith.constant 0 : index
    %c1 = arith.constant 1 : index
    %c0_8 = arith.constant 0 : index
    %c0_9 = arith.constant 0 : index
    %9 = vector.load %arg3[%c0_7, %c1, %c0_8, %c0_9] : memref<1x2x8x128xf32, #tpu.memory_space<vmem>>, vector<1x1x8x128xf32>
    %10 = vector.shape_cast %9 : vector<1x1x8x128xf32> to vector<8x128xf32>
    %11 = vector.shape_cast %8 : vector<8x128xf32> to vector<1x1x8x128xf32>
    tpu.vector_store %arg3[%c0_7, %c1, %c0_8, %c0_9], %11 {strides = array<i32>} : memref<1x2x8x128xf32, #tpu.memory_space<vmem>>, vector<1x1x8x128xf32>,
    return
  }
  func.func @transform_0(%arg0: i32, %arg1: i32) -> (i32, i32, i32) {
    %c0_i32 = arith.constant 0 : i32
    %c0_i32_0 = arith.constant 0 : i32
    return %arg0, %arg1, %c0_i32 : i32, i32, i32
  }
  func.func @transform_1(%arg0: i32, %arg1: i32) -> (i32, i32, i32, i32) {
    %c0_i32 = arith.constant 0 : i32
    %c0_i32_0 = arith.constant 0 : i32
    %c0_i32_1 = arith.constant 0 : i32
    return %arg0, %c0_i32, %arg1, %c0_i32_0 : i32, i32, i32, i32
  }
}

</mosaic_0001>

<bundles_post_ra>
// kernel: tpu_custom_call.1
= control target key start
LH: loop header
LB: loop body
LE: loop exit
PB: predicated region body
PF: predicated region fallthrough
CT: control target
= control target key end

     0   :  { %6 = vsyncpa [#allocation3], 0  ;;  %s585_s0 = inlined_call_operand.hbm [shape: f32[2,8,128], index: 0, kind: input, shape index: {}]   ;;  %s586_s1 = inlined_call_operand.hbm [shape: f32[2,2,8,128], index: 1, kind: output, shape index: {}]  }
   0x1   :  { %8 = vsyncpa [#allocation3 + $0x1], 0 }
   0x2   :  { %9 = vsyncpa [#allocation4], 0 }
   0x3   :  { %11 = vsyncpa [#allocation4 + $0x1], 0  ;;  %s464_s6 = smov 0   ;;  %s466_s7 = smov 0  }
   0x4   :  { %s468_s8 = smov 0   ;;  %s470_s9 = smov 0  }
   0x5   :  { %s472_s10 = smov 0   ;;  %s474_s11 = smov 0  }
   0x6 LB: > { %s258_s12 = sadd.s32 4294967295, %s450_s11   ;;  %s259_s13 = sadd.s32 4294967294, %s450_s11   ;;  %s450_s11 = sphi %s474_s11, %s17_s11   ;;  %s446_s10 = sphi %s472_s10, %s595_s10   ;;  %s442_s9 = sphi %s470_s9, %s594_s9   ;;  %s438_s8 = sphi %s468_s8, %s593_s8   ;;  %s434_s7 = sphi %s466_s7, %s592_s7   ;;  %s430_s6 = sphi %s464_s6, %s591_s6  }
   0x7   : > { %s29_s14 = sadd.s32 1, %s446_s10  ;;  %s38_s15 = sadd.s32 1, %s438_s8 }
   0x8   : > { %p31_p0 = scmp.ge.s32.totalorder %s29_s14, 2  ;;  %p45_p1 = scmp.ne.s32.totalorder %s438_s8, %s434_s7 }
   0x9   : > { %p46_p2 = scmp.eq.s32.totalorder %s450_s11, 0  ;;  %p51_p3 = scmp.ne.s32.totalorder %s434_s7, %s430_s6 }
   0xa   : > { %s597_s14 = smov (%p31_p0, %s29_s14), 0  ;;  %p52_p5 = scmp.eq.s32.totalorder %s258_s12, 0 }
   0xb   : > { %p505_p4 = por %p46_p2, %p45_p1  ;;  %s33_s17 = ssub.s32 %s446_s10, %s597_s14 }
   0xc   : > { %p77_p6 = scmp.eq.s32.totalorder %s258_s12, 1  ;;  %p36_p7 = scmp.eq.s32.totalorder %s33_s17, 0 }
   0xd   : > { %p511_p8 = por %p52_p5, %p51_p3  ;;  %p83_p10 = scmp.eq.s32.totalorder %s259_s13, 1 }
   0xe   : > { %p515_p9 = por %p77_p6, %p45_p1  ;;  %p261_p12 = scmp.ge.s32.totalorder %s450_s11, 2 }
   0xf   : > { %s520_s20 = scalar_select %p36_p7, %s438_s8, %s38_s15  }
  0x10   : > { %p522_p11 = por %p83_p10, %p51_p3  ;;  %p286_p13 = scmp.lt.s32.totalorder %s450_s11, 2 }
  0x11   : > { %s103_s22 = sand.u32 1, %s438_s8   ;;  %s263_s24 = sshll.u32 %s446_s10, 3 }
  0x12   : > { %s262_s23 = sshll.u32 %s103_s22, 3  ;;  %s112_s27 = scalar_lea.hbm %s585_s0, %s263_s24 }
  0x13   : > { %s107_s28 = scalar_lea.vmem [#allocation2], %s262_s23  ;;  %s114_s30 = sshll.u32 %s112_s27, 4  ;;  %s115_s30 = int_to_ptr.hbm [resolvable:$true] %s114_s30 }
  0x14   : > { %s116_s29 = sshll.u32 %s107_s28, 4  ;;  %p279_p0 = pnand %p286_p13, %p505_p4  ;;  %s117_s29 = int_to_ptr.vmem [resolvable:$true] %s116_s29 }
  0x15   : > { %p264_p1 = scmp.ge.s32.totalorder %s450_s11, 1  ;;  %p121_p2 = scmp.lt.s32.totalorder %s450_s11, 3 }
  0x16   : > { %s104_s2 = scalar_lea.sflag [#allocation3], %s103_s22 }
  0x17   : > { %281 = dma.hbm_to_vmem [thread:$0]  (!%p279_p0), %s115_s30, 128, %s117_s29, %s104_s2  }
  0x18   : > { %p122_p3 = pnand %p264_p1, %p121_p2 }
  0x19   : > { %s538_s3 = sand.u32 (!%p122_p3), 1, %s434_s7  }
  0x1a   : > { %125 = sbr.rel (%p122_p3) target bundleno = 48 (0x30), region = 24  ;;  %s265_s4 = sshll.u32 (!%p122_p3), %s538_s3, 3 }
  0x1b   : > { %s128_s5 = scalar_lea.sflag (!%p122_p3), [#allocation3], %s538_s3  ;;  %s131_s12 = scalar_lea.vmem (!%p122_p3), [#allocation2], %s265_s4 }
  0x1f   : > { %421 = dma.done.wait (%p511_p8), %s128_s5, 128  }
  0x20   : > { %423 = vsyncadd (%p511_p8), %s128_s5, 4294967168  ;;  %s266_s13 = sshll.u32 %s538_s3, 4  ;;  %s273_s15 = sshll.u32 %s442_s9, 4  ;;  %v151_v0 = vld [vmem:[%s131_s12] sm:$0xff] }
  0x21   : > { %s170_s22 = scalar_lea.hbm %s586_s1, %s273_s15  ;;  %s150_s23 = scalar_lea.vmem [#allocation5], %s266_s13  ;;  %v152_v1 = vmax.f32 %v151_v0, 0.0  ;;  %v154_v2 = vmin.f32 %v151_v0, 0.0 }
  0x22   : > { %s171_s24 = sshll.u32 %s150_s23, 4  ;;  %s173_s25 = sshll.u32 %s170_s22, 4  ;;  %s172_s24 = int_to_ptr.vmem [resolvable:$true] %s171_s24  ;;  %s174_s25 = int_to_ptr.hbm [resolvable:$true] %s173_s25 }
  0x23   : > { %153 = vst [vmem:[%s150_s23] sm:$0xff] %v152_v1  ;;  %s158_s18 = scalar_lea.sflag [#allocation4], %s538_s3  ;;  %s382_s26 = sshra.s32 %s174_s25, 4  ;;  %s383_s26 = int_to_ptr.hbm [resolvable:$true] %s382_s26 }
  0x24   : > { %267 = vst [vmem:[%s150_s23 + $0x8] sm:$0xff] %v154_v2  ;;  %s384_s27 = scalar_lea.hbm %s383_s26, 16  ;;  %s388_s29 = scalar_lea.hbm %s586_s1, 32 }
  0x25   : > { %p385_p4 = scmp.ne.s32.totalorder %s383_s26, %s384_s27  ;;  %p389_p7 = scmp.lt.s32.totalorder %s383_s26, %s586_s1 }
  0x26   : > { %p390_p8 = scmp.lt.s32.totalorder %s388_s29, %s384_s27 }
  0x27   : > { %p386_p5 = pnand %p385_p4, %p515_p9 }
  0x28   : > { %p391_p10 = por %p390_p8, %p389_p7 }
  0x29   : > { %p387_p6 = pneg %p386_p5 }
  0x2b   : > { %p392_p13 = pnand %p391_p10, %p387_p6 }
  0x2d   : > { %395 = shalt.err (!%p392_p13)
}
  0x2e   : > { %s452_s3 = smov 128   ;;  %s453_s4 = smov 8  }
  0x2f   : > { %276 = dma.vmem_to_hbm [thread:$0]  (%p515_p9), %s172_s24, 256, %s174_s25, %s158_s18, %s452_s3, %s452_s3, %s453_s4  }
  0x30 PF: > { %s188_s5 = sand.u32 1, %s430_s6   ;;  %p283_p0 = pnand %p261_p12, %p522_p11 }
  0x31   : > { %s189_s12 = scalar_lea.sflag [#allocation4], %s188_s5 }
  0x32   : > { %p284_p1 = pneg %p283_p0 }
  0x34   : > { %425 = dma.done.wait (%p284_p1), %s189_s12, 256  }
  0x35   : > { %427 = vsyncadd (%p284_p1), %s189_s12, 4294967040  ;;  %s17_s11 = sadd.s32 1, %s450_s11   ;;  %s591_s6 = smov %s434_s7 }
  0x36   : > { %p14_p2 = scmp.ge.s32.totalorder %s17_s11, 4   ;;  %s592_s7 = smov %s438_s8 }
  0x37   : > { %s593_s8 = smov %s520_s20  ;;  %s594_s9 = smov %s446_s10 }
  0x38   : > { %s595_s10 = smov %s597_s14  ;;  %16 = sbr.rel (!%p14_p2) target bundleno = 6 (0x6), region = 70 }
  0x3d   :  { %195 = vsyncpa [#allocation3], 1 }
  0x3e   :  { %197 = vsyncpa [#allocation3 + $0x1], 1 }
  0x3f   :  { %198 = vsyncpa [#allocation4], 1 }
  0x40   :  { %200 = vsyncpa [#allocation4 + $0x1], 1 }

</bundles_post_ra>
